<compile_context>
chip_gen: v5e
topology: v5e:2x2
jax: 0.10.0
libtpu: 0.0.40
codegen_flags: <defaults>
</compile_context>

<pallas_src>
import math

import jax
import jax.numpy as jnp
from jax.experimental import pallas as pl
from jax.experimental.pallas import tpu as pltpu

HIDDEN = 16      # fixed by the module definition
_LANE = 128      # TPU lane width (last-dim granularity)


def _round_up(x, m):
    return (x + m - 1) // m * m


def _sublane(dtype):
    # second-minor granularity: 8 rows for 32-bit, 16 for 16-bit, 32 for 8-bit
    itemsize = jnp.dtype(dtype).itemsize
    return {4: 8, 2: 16, 1: 32}.get(itemsize, 8)


def _fold_factor(in_size, out_size, batch):
    """Row-fold factor F so that x can be viewed (free row-major reshape) as
    (B/F, F*in).  Prefer an F that makes BOTH the x slab and the output slab
    full multiples of 128 lanes; fall back to an x-only fold; else no fold.
    Requires batch % F == 0 so the reshape is a free view (no pad copy)."""
    candidates = []
    if _LANE % in_size == 0 and _LANE % out_size == 0:
        candidates.append(math.lcm(_LANE // in_size, _LANE // out_size))
    if _LANE % in_size == 0:
        candidates.append(_LANE // in_size)
    for f in candidates:
        if 1 < f <= 128 and batch % f == 0:
            return f
    return 1


def dsfrho_kernel(x_ref, w1_ref, b1_ref, w2_ref, b2_ref, o_ref):
    # fc1 on the MXU with f32 accumulation; bias + ReLU on the VPU in f32.
    h = jnp.dot(x_ref[...], w1_ref[...], preferred_element_type=jnp.float32)
    h = jnp.maximum(h + b1_ref[...], 0.0)
    # fc2 in f32 (w2 / b2 were pre-cast to f32 in the wrapper, no per-step cast).
    y = jnp.dot(h, w2_ref[...], preferred_element_type=jnp.float32) + b2_ref[...]
    o_ref[...] = y.astype(o_ref.dtype)


def dsfrho_forward(x, w1, b1, w2, b2, *, tile_rows=None, vmem_limit_bytes=None):
    """x: (B, input_size); w1: (input_size, 16); b1: (1, 16);
       w2: (16, output_size); b2: (1, output_size)."""
    B, in_size = x.shape
    out_size = w2.shape[1]
    dtype = x.dtype
    itemsize = jnp.dtype(dtype).itemsize
    sub = _sublane(dtype)

    # ---- lane folding (free views + tiny resident block-diagonal weights) ----
    F = _fold_factor(in_size, out_size, B)
    if F > 1:
        x_v = x.reshape(B // F, F * in_size)                       # free view
        w1_v = jnp.kron(jnp.eye(F, dtype=w1.dtype), w1).astype(dtype)
        b1_v = jnp.tile(b1.astype(jnp.float32), (1, F))
        w2_v = jnp.kron(jnp.eye(F, dtype=jnp.float32), w2.astype(jnp.float32))
        b2_v = jnp.tile(b2.astype(jnp.float32), (1, F))
    else:
        x_v = x
        w1_v = w1.astype(dtype)
        b1_v = b1.astype(jnp.float32)
        w2_v = w2.astype(jnp.float32)
        b2_v = b2.astype(jnp.float32)

    rows, in_cols = x_v.shape
    hid_cols = F * HIDDEN
    out_cols = F * out_size

    # ---- batch-tile selection ----
    if tile_rows is None:
        # ~8K original batch rows per grid step amortizes the ~0.35us step cost.
        tile_rows = _round_up(max(8192 // F, sub), sub)
        # Keep >= 8 grid steps on big batches so v7x's two TensorCores both get
        # work under dimension_semantics=("parallel",).
        if rows >= 8 * 64:
            tile_rows = min(tile_rows, _round_up(pl.cdiv(rows, 8), sub))
    tile_rows = max(sub, min(_round_up(tile_rows, sub), _round_up(rows, sub)))

    def _blk_bytes(r, c):
        return _round_up(r, sub) * _round_up(c, _LANE) * itemsize

    # Shrink the tile until the double-buffered streamed blocks fit a budget
    # that is safe even on v7x (64 MiB physical / 32 MiB default scoped VMEM).
    pipe_budget = 20 << 20
    while tile_rows > sub and 2 * (_blk_bytes(tile_rows, in_cols)
                                   + _blk_bytes(tile_rows, out_cols)) > pipe_budget:
        tile_rows = max(sub, _round_up(tile_rows // 2, sub))

    grid = (pl.cdiv(rows, tile_rows),)

    if vmem_limit_bytes is None:
        w_bytes = (_round_up(in_cols, 8) * _round_up(hid_cols, _LANE)
                   + _round_up(hid_cols, 8) * _round_up(out_cols, _LANE)
                   + 2 * 8 * _LANE) * 4
        pipe_bytes = 2 * (_blk_bytes(tile_rows, in_cols)
                          + _blk_bytes(tile_rows, out_cols))
        vmem_limit_bytes = min(pipe_bytes + w_bytes + (6 << 20), 40 << 20)

    # Advisory cost hint (actual executed flops / streamed bytes).
    flops = 2 * rows * (in_cols * hid_cols + hid_cols * out_cols)
    bytes_accessed = ((x_v.size + rows * out_cols) * itemsize
                      + w1_v.size * jnp.dtype(w1_v.dtype).itemsize
                      + (b1_v.size + w2_v.size + b2_v.size) * 4)
    cost = pl.CostEstimate(flops=int(flops), transcendentals=0,
                           bytes_accessed=int(bytes_accessed))

    out = pl.pallas_call(
        dsfrho_kernel,
        out_shape=jax.ShapeDtypeStruct((rows, out_cols), dtype),
        grid_spec=pl.GridSpec(
            grid=grid,
            in_specs=[
                pl.BlockSpec((tile_rows, in_cols), lambda i: (i, 0)),   # x (streamed)
                pl.BlockSpec((in_cols, hid_cols), lambda i: (0, 0)),    # W1 (resident)
                pl.BlockSpec((1, hid_cols), lambda i: (0, 0)),          # b1 (resident, f32)
                pl.BlockSpec((hid_cols, out_cols), lambda i: (0, 0)),   # W2 (resident, f32)
                pl.BlockSpec((1, out_cols), lambda i: (0, 0)),          # b2 (resident, f32)
            ],
            out_specs=pl.BlockSpec((tile_rows, out_cols), lambda i: (i, 0)),
        ),
        compiler_params=pltpu.CompilerParams(
            dimension_semantics=("parallel",),          # megacore sharding on v7x
            vmem_limit_bytes=int(vmem_limit_bytes)),
        cost_estimate=cost,
    )(x_v, w1_v, b1_v, w2_v, b2_v)

    return out.reshape(B, out_size)                      # free row-major view


def init_params(key, input_size, output_size, dtype=jnp.float32):
    """Deterministic synthetic init (uniform, PyTorch-Linear-style bounds).
    Weights stored as (in, out) = transpose of nn.Linear's (out, in)."""
    k1, k2, k3, k4 = jax.random.split(key, 4)
    bound1 = 1.0 / (input_size ** 0.5)
    bound2 = 1.0 / (HIDDEN ** 0.5)
    w1 = jax.random.uniform(k1, (input_size, HIDDEN), dtype, -bound1, bound1)
    b1 = jax.random.uniform(k2, (1, HIDDEN), dtype, -bound1, bound1)
    w2 = jax.random.uniform(k3, (HIDDEN, output_size), dtype, -bound2, bound2)
    b2 = jax.random.uniform(k4, (1, output_size), dtype, -bound2, bound2)
    return w1, b1, w2, b2


def dsfrho_reference(x, w1, b1, w2, b2):
    h = jnp.maximum(x @ w1 + b1, 0.0)
    return h @ w2 + b2


if __name__ == "__main__":
    key = jax.random.PRNGKey(0)
    k_p, k1, k2, k3 = jax.random.split(key, 4)

    input_size, output_size = 32, 8
    w1, b1, w2, b2 = init_params(k_p, input_size, output_size)

    def check(name, batch, k):
        x = jax.random.normal(k, (batch, input_size), jnp.float32)
        out = jax.block_until_ready(dsfrho_forward(x, w1, b1, w2, b2))
        ref = dsfrho_reference(x, w1, b1, w2, b2)
        assert out.shape == (batch, output_size), f"{name}: bad shape {out.shape}"
        assert jnp.allclose(out, ref, atol=1e-5, rtol=1e-5), f"{name}: mismatch"

    # Fully lane-folded path (F=16): x viewed as (4,512), out as (4,128).
    check("folded-small", 64, k1)
    # Lane-folded path with a partial (masked) last block: 4000 -> 250 folded rows.
    check("folded-partial", 4000, k2)
    # Ragged batch (not divisible by the fold factor): unfolded cdiv-grid
    # fallback, multi-step pipeline + masked partial last block, no padding.
    check("ragged-fallback", 1030, k3)

    print("KERNEL_OK")
</pallas_src>

<mosaic_0001>
module attributes {stable_mosaic.version = 11 : i64} {
  func.func @dsfrho_kernel(%arg0: i32, %arg1: memref<8x512xf32, #tpu.memory_space<vmem>>, %arg2: memref<512x256xf32, #tpu.memory_space<vmem>>, %arg3: memref<1x256xf32, #tpu.memory_space<vmem>>, %arg4: memref<256x128xf32, #tpu.memory_space<vmem>>, %arg5: memref<1x128xf32, #tpu.memory_space<vmem>>, %arg6: memref<8x128xf32, #tpu.memory_space<vmem>>) attributes {dimension_semantics = [#tpu.dimension_semantics<parallel>], iteration_bounds = array<i64: 1>, scalar_prefetch = 0 : i64, scratch_operands = 0 : i64, tpu.core_type = #tpu.core_type<tc>, window_params = [{transform_indices = @transform_0, window_bounds = array<i64: 8, 512>}, {pipeline_mode = #tpu.pipeline_mode<synchronous>, transform_indices = @transform_1, window_bounds = array<i64: 512, 256>}, {pipeline_mode = #tpu.pipeline_mode<synchronous>, transform_indices = @transform_2, window_bounds = array<i64: 1, 256>}, {pipeline_mode = #tpu.pipeline_mode<synchronous>, transform_indices = @transform_3, window_bounds = array<i64: 256, 128>}, {pipeline_mode = #tpu.pipeline_mode<synchronous>, transform_indices = @transform_4, window_bounds = array<i64: 1, 128>}, {transform_indices = @transform_5, window_bounds = array<i64: 8, 128>}]} {
    %c0 = arith.constant 0 : index
    %c0_0 = arith.constant 0 : index
    %0 = vector.load %arg1[%c0, %c0_0] : memref<8x512xf32, #tpu.memory_space<vmem>>, vector<8x512xf32>
    %c0_1 = arith.constant 0 : index
    %c0_2 = arith.constant 0 : index
    %1 = vector.load %arg2[%c0_1, %c0_2] : memref<512x256xf32, #tpu.memory_space<vmem>>, vector<512x256xf32>
    %cst = arith.constant dense<0.000000e+00> : vector<8x256xf32>
    %2 = tpu.matmul %0, %1, %cst {dimension_numbers = #tpu.dot_dimension_numbers<[1], [0], [0], [1], [0, 0, 1, 1], [], []>} : vector<8x512xf32>, vector<512x256xf32>, vector<8x256xf32> -> vector<8x256xf32>
    %c0_3 = arith.constant 0 : index
    %c0_4 = arith.constant 0 : index
    %3 = vector.load %arg3[%c0_3, %c0_4] : memref<1x256xf32, #tpu.memory_space<vmem>>, vector<1x256xf32>
    %4 = vector.broadcast %3 : vector<1x256xf32> to vector<8x256xf32>
    %5 = arith.addf %2, %4 : vector<8x256xf32>
    %cst_5 = arith.constant 0.000000e+00 : f32
    %6 = vector.broadcast %cst_5 : f32 to vector<8x256xf32>
    %7 = arith.maximumf %5, %6 : vector<8x256xf32>
    %c0_6 = arith.constant 0 : index
    %c0_7 = arith.constant 0 : index
    %8 = vector.load %arg4[%c0_6, %c0_7] : memref<256x128xf32, #tpu.memory_space<vmem>>, vector<256x128xf32>
    %cst_8 = arith.constant dense<0.000000e+00> : vector<8x128xf32>
    %9 = tpu.matmul %7, %8, %cst_8 {dimension_numbers = #tpu.dot_dimension_numbers<[1], [0], [0], [1], [0, 0, 1, 1], [], []>} : vector<8x256xf32>, vector<256x128xf32>, vector<8x128xf32> -> vector<8x128xf32>
    %c0_9 = arith.constant 0 : index
    %c0_10 = arith.constant 0 : index
    %10 = vector.load %arg5[%c0_9, %c0_10] : memref<1x128xf32, #tpu.memory_space<vmem>>, vector<1x128xf32>
    %11 = vector.broadcast %10 : vector<1x128xf32> to vector<8x128xf32>
    %12 = arith.addf %9, %11 : vector<8x128xf32>
    %c0_11 = arith.constant 0 : index
    %c0_12 = arith.constant 0 : index
    %13 = vector.load %arg6[%c0_11, %c0_12] : memref<8x128xf32, #tpu.memory_space<vmem>>, vector<8x128xf32>
    tpu.vector_store %arg6[%c0_11, %c0_12], %12 {strides = array<i32>} : memref<8x128xf32, #tpu.memory_space<vmem>>, vector<8x128xf32>,
    return
  }
  func.func @transform_0(%arg0: i32) -> (i32, i32) {
    %c0_i32 = arith.constant 0 : i32
    %c0_i32_0 = arith.constant 0 : i32
    return %arg0, %c0_i32 : i32, i32
  }
  func.func @transform_1(%arg0: i32) -> (i32, i32) {
    %c0_i32 = arith.constant 0 : i32
    %c0_i32_0 = arith.constant 0 : i32
    %c0_i32_1 = arith.constant 0 : i32
    return %c0_i32, %c0_i32_0 : i32, i32
  }
  func.func @transform_2(%arg0: i32) -> (i32, i32) {
    %c0_i32 = arith.constant 0 : i32
    %c0_i32_0 = arith.constant 0 : i32
    %c0_i32_1 = arith.constant 0 : i32
    return %c0_i32, %c0_i32_0 : i32, i32
  }
  func.func @transform_3(%arg0: i32) -> (i32, i32) {
    %c0_i32 = arith.constant 0 : i32
    %c0_i32_0 = arith.constant 0 : i32
    %c0_i32_1 = arith.constant 0 : i32
    return %c0_i32, %c0_i32_0 : i32, i32
  }
  func.func @transform_4(%arg0: i32) -> (i32, i32) {
    %c0_i32 = arith.constant 0 : i32
    %c0_i32_0 = arith.constant 0 : i32
    %c0_i32_1 = arith.constant 0 : i32
    return %c0_i32, %c0_i32_0 : i32, i32
  }
  func.func @transform_5(%arg0: i32) -> (i32, i32) {
    %c0_i32 = arith.constant 0 : i32
    %c0_i32_0 = arith.constant 0 : i32
    return %arg0, %c0_i32 : i32, i32
  }
}

</mosaic_0001>

<bundles_post_ra>
// kernel: tpu_custom_call.1
= control target key start
LH: loop header
LB: loop body
LE: loop exit
PB: predicated region body
PF: predicated region fallthrough
CT: control target
= control target key end

     0   :  { %10 = vsyncpa [#allocation3], 0  ;;  %s698_s0 = inlined_call_operand.hbm [shape: f32[4,512], index: 0, kind: input, shape index: {}]   ;;  %s699_s1 = inlined_call_operand.hbm [shape: f32[512,256], index: 1, kind: input, shape index: {}]   ;;  %s700_s2 = inlined_call_operand.hbm [shape: f32[1,256], index: 2, kind: input, shape index: {}]   ;;  %s701_s3 = inlined_call_operand.hbm [shape: f32[256,128], index: 3, kind: input, shape index: {}]   ;;  %s702_s4 = inlined_call_operand.vmem [shape: f32[1,128], index: 4, kind: input, shape index: {}]   ;;  %s703_s5 = inlined_call_operand.hbm [shape: f32[4,128], index: 5, kind: output, shape index: {}]  }
   0x1   :  { %11 = vsyncpa [#allocation6], 0 }
   0x2   :  { %12 = vsyncpa [#allocation9], 0 }
   0x3   :  { %13 = vsyncpa [#allocation4], 0 }
   0x4   :  { %17 = vsyncadd [#allocation3], 256  ;;  %s31_s20 = sshll.u32 %s699_s1, 4  ;;  %s639_s21 = smov [#allocation5]   ;;  %s32_s20 = int_to_ptr.hbm [resolvable:$true] %s31_s20 }
   0x5   :  { %s33_s22 = sshll.u32 %s639_s21, 4  ;;  %s18_s25 = sshll.u32 %s698_s0, 4  ;;  %s34_s22 = int_to_ptr.vmem [resolvable:$true] %s33_s22  ;;  %s19_s25 = int_to_ptr.hbm [resolvable:$true] %s18_s25 }
   0x6   :  { %s640_s26 = smov 256   ;;  %s641_s27 = smov 16  }
   0x7   :  { %39 = dma.hbm_to_vmem [thread:$0]  %s32_s20, 16384, %s34_s22, [#allocation6], %s640_s26, %s640_s26, %s641_s27  }
   0x8   :  { %s642_s28 = smov [#allocation2]   ;;  %s45_s7 = sshll.u32 %s700_s2, 4  ;;  %s46_s7 = int_to_ptr.hbm [resolvable:$true] %s45_s7 }
   0x9   :  { %s20_s29 = sshll.u32 %s642_s28, 4  ;;  %s55_s9 = sshll.u32 %s701_s3, 4  ;;  %s21_s29 = int_to_ptr.vmem [resolvable:$true] %s20_s29  ;;  %s56_s9 = int_to_ptr.hbm [resolvable:$true] %s55_s9 }
   0xa   :  { %26 = dma.hbm_to_vmem [thread:$0]  %s19_s25, 256, %s21_s29, [#allocation3], %s640_s26, %s640_s26, %s641_s27  }
   0xb   :  { %s643_s10 = smov [#allocation7]   ;;  %s644_s0 = smov [#allocation8]  }
   0xc   :  { %s47_s11 = sshll.u32 %s643_s10, 4  ;;  %s57_s12 = sshll.u32 %s644_s0, 4  ;;  %s48_s11 = int_to_ptr.vmem [resolvable:$true] %s47_s11  ;;  %s58_s12 = int_to_ptr.vmem [resolvable:$true] %s57_s12 }
   0xd   :  { %50 = dma.hbm_to_vmem [thread:$0]  %s46_s7, 32, %s48_s11, [#allocation6]  }
   0xe   :  { %s645_s13 = smov 128   ;;  %s646_s14 = smov 8  }
   0xf   :  { %63 = dma.hbm_to_vmem [thread:$0]  %s56_s9, 4096, %s58_s12, [#allocation9], %s645_s13, %s645_s13, %s646_s14  }
  0x10   :  { %631 = dma.done.wait [#allocation3], 512  }
  0x11   :  { %632 = vsyncadd [#allocation3], 4294966784 }
  0x12   :  { %633 = dma.done.wait [#allocation6], 16416  }
  0x13   :  { %634 = vsyncadd [#allocation6], 4294950880 }
  0x14   :  { %635 = dma.done.wait [#allocation9], 4096  }
  0x15   :  { %636 = vsyncadd [#allocation9], 4294963200  ;;  %v180_v0 = vld [vmem:[#allocation5 + $0x2f0] sm:$0xff]  ;;  %v178_v2 = vld [vmem:[#allocation5 + $0x2e0] sm:$0xff] }
  0x16   :  { %v116_v1 = vld [vmem:[#allocation5 + $0xf0] sm:$0xff]  ;;  %279 = vmatpush.msra.mxu2 %v180_v0  ;;  %v114_v4 = vld [vmem:[#allocation5 + $0xe0] sm:$0xff]  ;;  %v181_v62 = vld [vmem:[#allocation5 + $0x2f8] sm:$0xff] }
  0x17   :  { %239 = vmatpush.msra.mxu0 %v116_v1  ;;  %v212_v3 = vld [vmem:[#allocation5 + $0x3f0] sm:$0xff]  ;;  %v210_v7 = vld [vmem:[#allocation5 + $0x3e0] sm:$0xff]  ;;  %v117_v0 = vld [vmem:[#allocation5 + $0xf8] sm:$0xff] }
  0x18   :  { %v148_v5 = vld [vmem:[#allocation5 + $0x1f0] sm:$0xff]  ;;  %299 = vmatpush.msra.mxu3 %v212_v3  ;;  %280 = vmatpush.msra.mxu2 %v178_v2  ;;  %v146_v9 = vld [vmem:[#allocation5 + $0x1e0] sm:$0xff]  ;;  %v213_v1 = vld [vmem:[#allocation5 + $0x3f8] sm:$0xff] }
  0x19   :  { %259 = vmatpush.msra.mxu1 %v148_v5  ;;  %v176_v6 = vld [vmem:[#allocation5 + $0x2d0] sm:$0xff]  ;;  %240 = vmatpush.msra.mxu0 %v114_v4  ;;  %v174_v11 = vld [vmem:[#allocation5 + $0x2c0] sm:$0xff]  ;;  %v179_v2 = vld [vmem:[#allocation5 + $0x2e8] sm:$0xff] }
  0x1a   :  { %v112_v8 = vld [vmem:[#allocation5 + $0xd0] sm:$0xff]  ;;  %300 = vmatpush.msra.mxu3 %v210_v7  ;;  %v110_v12 = vld [vmem:[#allocation5 + $0xc0] sm:$0xff]  ;;  %281 = vmatpush.msra.mxu2 %v176_v6  ;;  %v115_v4 = vld [vmem:[#allocation5 + $0xe8] sm:$0xff] }
  0x1b   :  { %v208_v10 = vld [vmem:[#allocation5 + $0x3d0] sm:$0xff]  ;;  %260 = vmatpush.msra.mxu1 %v146_v9  ;;  %241 = vmatpush.msra.mxu0 %v112_v8  ;;  %v206_v14 = vld [vmem:[#allocation5 + $0x3c0] sm:$0xff]  ;;  %v149_v5 = vld [vmem:[#allocation5 + $0x1f8] sm:$0xff] }
  0x1c   :  { %v144_v13 = vld [vmem:[#allocation5 + $0x1d0] sm:$0xff]  ;;  %v142_v15 = vld [vmem:[#allocation5 + $0x1c0] sm:$0xff]  ;;  %301 = vmatpush.msra.mxu3 %v208_v10  ;;  %282 = vmatpush.msra.mxu2 %v174_v11  ;;  %v177_v6 = vld [vmem:[#allocation5 + $0x2d8] sm:$0xff] }
  0x1d   :  { %261 = vmatpush.msra.mxu1 %v144_v13  ;;  %v172_v16 = vld [vmem:[#allocation5 + $0x2b0] sm:$0xff]  ;;  %242 = vmatpush.msra.mxu0 %v110_v12  ;;  %v170_v20 = vld [vmem:[#allocation5 + $0x2a0] sm:$0xff]  ;;  %v211_v7 = vld [vmem:[#allocation5 + $0x3e8] sm:$0xff] }
  0x1e   :  { %v108_v17 = vld [vmem:[#allocation5 + $0xb0] sm:$0xff]  ;;  %302 = vmatpush.msra.mxu3 %v206_v14  ;;  %v106_v21 = vld [vmem:[#allocation5 + $0xa0] sm:$0xff]  ;;  %283 = vmatpush.msra.mxu2 %v172_v16  ;;  %v113_v8 = vld [vmem:[#allocation5 + $0xd8] sm:$0xff] }
  0x1f   :  { %v204_v18 = vld [vmem:[#allocation5 + $0x3b0] sm:$0xff]  ;;  %262 = vmatpush.msra.mxu1 %v142_v15  ;;  %243 = vmatpush.msra.mxu0 %v108_v17  ;;  %v202_v22 = vld [vmem:[#allocation5 + $0x3a0] sm:$0xff]  ;;  %v147_v9 = vld [vmem:[#allocation5 + $0x1e8] sm:$0xff] }
  0x20   :  { %v140_v19 = vld [vmem:[#allocation5 + $0x1b0] sm:$0xff]  ;;  %v138_v23 = vld [vmem:[#allocation5 + $0x1a0] sm:$0xff]  ;;  %303 = vmatpush.msra.mxu3 %v204_v18  ;;  %284 = vmatpush.msra.mxu2 %v170_v20  ;;  %v175_v10 = vld [vmem:[#allocation5 + $0x2c8] sm:$0xff] }
  0x21   :  { %263 = vmatpush.msra.mxu1 %v140_v19  ;;  %v168_v24 = vld [vmem:[#allocation5 + $0x290] sm:$0xff]  ;;  %244 = vmatpush.msra.mxu0 %v106_v21  ;;  %v166_v28 = vld [vmem:[#allocation5 + $0x280] sm:$0xff]  ;;  %v209_v11 = vld [vmem:[#allocation5 + $0x3d8] sm:$0xff] }
  0x22   :  { %v104_v25 = vld [vmem:[#allocation5 + $0x90] sm:$0xff]  ;;  %304 = vmatpush.msra.mxu3 %v202_v22  ;;  %v102_v29 = vld [vmem:[#allocation5 + $0x80] sm:$0xff]  ;;  %285 = vmatpush.msra.mxu2 %v168_v24  ;;  %v111_v12 = vld [vmem:[#allocation5 + $0xc8] sm:$0xff] }
  0x23   :  { %v200_v26 = vld [vmem:[#allocation5 + $0x390] sm:$0xff]  ;;  %264 = vmatpush.msra.mxu1 %v138_v23  ;;  %245 = vmatpush.msra.mxu0 %v104_v25  ;;  %v198_v30 = vld [vmem:[#allocation5 + $0x380] sm:$0xff]  ;;  %v145_v13 = vld [vmem:[#allocation5 + $0x1d8] sm:$0xff] }
  0x24   :  { %v136_v27 = vld [vmem:[#allocation5 + $0x190] sm:$0xff]  ;;  %v134_v31 = vld [vmem:[#allocation5 + $0x180] sm:$0xff]  ;;  %305 = vmatpush.msra.mxu3 %v200_v26  ;;  %286 = vmatpush.msra.mxu2 %v166_v28  ;;  %v83_v14 = vld [vmem:[#allocation2 + $0x8] sm:$0xff] }
  0x25   :  { %265 = vmatpush.msra.mxu1 %v136_v27  ;;  %v164_v32 = vld [vmem:[#allocation5 + $0x270] sm:$0xff]  ;;  %246 = vmatpush.msra.mxu0 %v102_v29  ;;  %v162_v36 = vld [vmem:[#allocation5 + $0x260] sm:$0xff]  ;;  %v85_v15 = vld [vmem:[#allocation2 + $0x18] sm:$0xff]  ;;  %228 = vst [vmem:[#allocation1 + $0x10] ss:$2 sm:$0xff] %v83_v14 }
  0x26   :  { %v100_v33 = vld [vmem:[#allocation5 + $0x70] sm:$0xff]  ;;  %306 = vmatpush.msra.mxu3 %v198_v30  ;;  %v98_v37 = vld [vmem:[#allocation5 + $0x60] sm:$0xff]  ;;  %287 = vmatpush.msra.mxu2 %v164_v32  ;;  %v173_v16 = vld [vmem:[#allocation5 + $0x2b8] sm:$0xff]  ;;  %230 = vst [vmem:[#allocation1 + $0x11] ss:$2 sm:$0xff] %v85_v15 }
  0x27   :  { %v196_v34 = vld [vmem:[#allocation5 + $0x370] sm:$0xff]  ;;  %266 = vmatpush.msra.mxu1 %v134_v31  ;;  %247 = vmatpush.msra.mxu0 %v100_v33  ;;  %v194_v38 = vld [vmem:[#allocation5 + $0x360] sm:$0xff]  ;;  %v207_v17 = vld [vmem:[#allocation5 + $0x3c8] sm:$0xff] }
  0x28   :  { %v132_v35 = vld [vmem:[#allocation5 + $0x170] sm:$0xff]  ;;  %v130_v39 = vld [vmem:[#allocation5 + $0x160] sm:$0xff]  ;;  %307 = vmatpush.msra.mxu3 %v196_v34  ;;  %288 = vmatpush.msra.mxu2 %v162_v36  ;;  %v109_v18 = vld [vmem:[#allocation5 + $0xb8] sm:$0xff] }
  0x29   :  { %267 = vmatpush.msra.mxu1 %v132_v35  ;;  %v160_v40 = vld [vmem:[#allocation5 + $0x250] sm:$0xff]  ;;  %248 = vmatpush.msra.mxu0 %v98_v37  ;;  %v158_v44 = vld [vmem:[#allocation5 + $0x240] sm:$0xff]  ;;  %v143_v19 = vld [vmem:[#allocation5 + $0x1c8] sm:$0xff] }
  0x2a   :  { %v96_v41 = vld [vmem:[#allocation5 + $0x50] sm:$0xff]  ;;  %308 = vmatpush.msra.mxu3 %v194_v38  ;;  %v94_v45 = vld [vmem:[#allocation5 + $0x40] sm:$0xff]  ;;  %289 = vmatpush.msra.mxu2 %v160_v40  ;;  %v171_v22 = vld [vmem:[#allocation5 + $0x2a8] sm:$0xff] }
  0x2b   :  { %v192_v42 = vld [vmem:[#allocation5 + $0x350] sm:$0xff]  ;;  %268 = vmatpush.msra.mxu1 %v130_v39  ;;  %249 = vmatpush.msra.mxu0 %v96_v41  ;;  %v190_v46 = vld [vmem:[#allocation5 + $0x340] sm:$0xff]  ;;  %v205_v23 = vld [vmem:[#allocation5 + $0x3b8] sm:$0xff] }
  0x2c   :  { %v128_v43 = vld [vmem:[#allocation5 + $0x150] sm:$0xff]  ;;  %v126_v47 = vld [vmem:[#allocation5 + $0x140] sm:$0xff]  ;;  %309 = vmatpush.msra.mxu3 %v192_v42  ;;  %290 = vmatpush.msra.mxu2 %v158_v44  ;;  %v107_v24 = vld [vmem:[#allocation5 + $0xa8] sm:$0xff] }
  0x2d   :  { %269 = vmatpush.msra.mxu1 %v128_v43  ;;  %v156_v48 = vld [vmem:[#allocation5 + $0x230] sm:$0xff]  ;;  %250 = vmatpush.msra.mxu0 %v94_v45  ;;  %v154_v52 = vld [vmem:[#allocation5 + $0x220] sm:$0xff]  ;;  %v141_v25 = vld [vmem:[#allocation5 + $0x1b8] sm:$0xff] }
  0x2e   :  { %v92_v49 = vld [vmem:[#allocation5 + $0x30] sm:$0xff]  ;;  %310 = vmatpush.msra.mxu3 %v190_v46  ;;  %v90_v53 = vld [vmem:[#allocation5 + $0x20] sm:$0xff]  ;;  %291 = vmatpush.msra.mxu2 %v156_v48  ;;  %v169_v26 = vld [vmem:[#allocation5 + $0x298] sm:$0xff] }
  0x2f   :  { %v188_v50 = vld [vmem:[#allocation5 + $0x330] sm:$0xff]  ;;  %270 = vmatpush.msra.mxu1 %v126_v47  ;;  %251 = vmatpush.msra.mxu0 %v92_v49  ;;  %v186_v54 = vld [vmem:[#allocation5 + $0x320] sm:$0xff]  ;;  %v203_v27 = vld [vmem:[#allocation5 + $0x3a8] sm:$0xff] }
  0x30   :  { %v124_v51 = vld [vmem:[#allocation5 + $0x130] sm:$0xff]  ;;  %v122_v55 = vld [vmem:[#allocation5 + $0x120] sm:$0xff]  ;;  %311 = vmatpush.msra.mxu3 %v188_v50  ;;  %292 = vmatpush.msra.mxu2 %v154_v52  ;;  %v105_v28 = vld [vmem:[#allocation5 + $0x98] sm:$0xff] }
  0x31   :  { %271 = vmatpush.msra.mxu1 %v124_v51  ;;  %v152_v56 = vld [vmem:[#allocation5 + $0x210] sm:$0xff]  ;;  %252 = vmatpush.msra.mxu0 %v90_v53  ;;  %v150_v60 = vld [vmem:[#allocation5 + $0x200] sm:$0xff]  ;;  %v139_v29 = vld [vmem:[#allocation5 + $0x1a8] sm:$0xff] }
  0x32   :  { %v88_v57 = vld [vmem:[#allocation5 + $0x10] sm:$0xff]  ;;  %312 = vmatpush.msra.mxu3 %v186_v54  ;;  %v86_v61 = vld [vmem:[#allocation5] sm:$0xff]  ;;  %293 = vmatpush.msra.mxu2 %v152_v56  ;;  %v167_v30 = vld [vmem:[#allocation5 + $0x288] sm:$0xff] }
  0x33   :  { %v184_v58 = vld [vmem:[#allocation5 + $0x310] sm:$0xff]  ;;  %272 = vmatpush.msra.mxu1 %v122_v55  ;;  %253 = vmatpush.msra.mxu0 %v88_v57  ;;  %v182_v63 = vld [vmem:[#allocation5 + $0x300] sm:$0xff]  ;;  %v201_v31 = vld [vmem:[#allocation5 + $0x398] sm:$0xff] }
  0x34   :  { %v120_v59 = vld [vmem:[#allocation5 + $0x110] sm:$0xff]  ;;  %313 = vmatpush.msra.mxu3 %v184_v58  ;;  %294 = vmatpush.msra.mxu2 %v150_v60  ;;  %v118_v3 = vld [vmem:[#allocation5 + $0x100] sm:$0xff]  ;;  %v103_v32 = vld [vmem:[#allocation5 + $0x88] sm:$0xff] }
  0x35   :  { %273 = vmatpush.msra.mxu1 %v120_v59  ;;  %254 = vmatpush.msra.mxu0 %v86_v61  ;;  %v82_v20 = vld [vmem:[#allocation2] sm:$0xff]  ;;  %v84_v21 = vld [vmem:[#allocation2 + $0x10] sm:$0xff]  ;;  %v137_v33 = vld [vmem:[#allocation5 + $0x198] sm:$0xff] }
  0x36   :  { %359 = vmatpush.msrb.mxu2 %v181_v62  ;;  %314 = vmatpush.msra.mxu3 %v182_v63  ;;  %224 = vst [vmem:[#allocation1] ss:$2 sm:$0xff] %v82_v20  ;;  %v165_v34 = vld [vmem:[#allocation5 + $0x278] sm:$0xff]  ;;  %v199_v35 = vld [vmem:[#allocation5 + $0x388] sm:$0xff] }
  0x37   :  { %319 = vmatpush.msrb.mxu0 %v117_v0  ;;  %274 = vmatpush.msra.mxu1 %v118_v3  ;;  %226 = vst [vmem:[#allocation1 + $0x1] ss:$2 sm:$0xff] %v84_v21  ;;  %v101_v36 = vld [vmem:[#allocation5 + $0x78] sm:$0xff]  ;;  %v135_v37 = vld [vmem:[#allocation5 + $0x188] sm:$0xff] }
  0x38   :  { %379 = vmatpush.msrb.mxu3 %v213_v1  ;;  %360 = vmatpush.msrb.mxu2 %v179_v2  ;;  %v163_v38 = vld [vmem:[#allocation5 + $0x268] sm:$0xff]  ;;  %v197_v39 = vld [vmem:[#allocation5 + $0x378] sm:$0xff]  ;;  %v234_v54 = vld.sshfl [vmem:[#allocation1 + $0x18] sm:$0xff pattern:$0x75316420] }
  0x39   :  { %320 = vmatpush.msrb.mxu0 %v115_v4  ;;  %339 = vmatpush.msrb.mxu1 %v149_v5  ;;  %v99_v40 = vld [vmem:[#allocation5 + $0x68] sm:$0xff]  ;;  %v133_v41 = vld [vmem:[#allocation5 + $0x178] sm:$0xff] }
  0x3a   :  { %361 = vmatpush.msrb.mxu2 %v177_v6  ;;  %380 = vmatpush.msrb.mxu3 %v211_v7  ;;  %v161_v42 = vld [vmem:[#allocation5 + $0x258] sm:$0xff]  ;;  %v195_v43 = vld [vmem:[#allocation5 + $0x368] sm:$0xff] }
  0x3b   :  { %321 = vmatpush.msrb.mxu0 %v113_v8  ;;  %340 = vmatpush.msrb.mxu1 %v147_v9  ;;  %v97_v44 = vld [vmem:[#allocation5 + $0x58] sm:$0xff]  ;;  %v131_v45 = vld [vmem:[#allocation5 + $0x168] sm:$0xff] }
  0x3c   :  { %362 = vmatpush.msrb.mxu2 %v175_v10  ;;  %381 = vmatpush.msrb.mxu3 %v209_v11  ;;  %v159_v46 = vld [vmem:[#allocation5 + $0x248] sm:$0xff]  ;;  %v193_v47 = vld [vmem:[#allocation5 + $0x358] sm:$0xff] }
  0x3d   :  { %322 = vmatpush.msrb.mxu0 %v111_v12  ;;  %341 = vmatpush.msrb.mxu1 %v145_v13  ;;  %v233_v48 = vld.sshfl [vmem:[#allocation1 + $0x10] sm:$0xff pattern:$0x75316420]  ;;  %v129_v50 = vld [vmem:[#allocation5 + $0x158] sm:$0xff] }
  0x3e   :  { %363 = vmatpush.msrb.mxu2 %v173_v16  ;;  %382 = vmatpush.msrb.mxu3 %v207_v17  ;;  %v95_v49 = vld [vmem:[#allocation5 + $0x48] sm:$0xff]  ;;  %v157_v51 = vld [vmem:[#allocation5 + $0x238] sm:$0xff]  ;;  %v232_v59 = vld.sshfl [vmem:[#allocation1 + $0x8] sm:$0xff pattern:$0x75316420] }
  0x3f   :  { %323 = vmatpush.msrb.mxu0 %v109_v18  ;;  %342 = vmatpush.msrb.mxu1 %v143_v19  ;;  %v191_v52 = vld [vmem:[#allocation5 + $0x348] sm:$0xff]  ;;  %v231_v53 = vld.sshfl [vmem:[#allocation1] sm:$0xff pattern:$0x75316420] }
  0x40   :  { %364 = vmatpush.msrb.mxu2 %v171_v22  ;;  %383 = vmatpush.msrb.mxu3 %v205_v23  ;;  %v93_v55 = vld [vmem:[#allocation5 + $0x38] sm:$0xff]  ;;  %v127_v56 = vld [vmem:[#allocation5 + $0x148] sm:$0xff] }
  0x41   :  { %324 = vmatpush.msrb.mxu0 %v107_v24  ;;  %343 = vmatpush.msrb.mxu1 %v141_v25  ;;  %v155_v57 = vld [vmem:[#allocation5 + $0x228] sm:$0xff]  ;;  %v189_v58 = vld [vmem:[#allocation5 + $0x338] sm:$0xff] }
  0x42   :  { %365 = vmatpush.msrb.mxu2 %v169_v26  ;;  %384 = vmatpush.msrb.mxu3 %v203_v27  ;;  %v91_v60 = vld [vmem:[#allocation5 + $0x28] sm:$0xff]  ;;  %v125_v61 = vld [vmem:[#allocation5 + $0x138] sm:$0xff] }
  0x43   :  { %325 = vmatpush.msrb.mxu0 %v105_v28  ;;  %344 = vmatpush.msrb.mxu1 %v139_v29  ;;  %v153_v62 = vld [vmem:[#allocation5 + $0x218] sm:$0xff]  ;;  %v187_v63 = vld [vmem:[#allocation5 + $0x328] sm:$0xff] }
  0x44   :  { %366 = vmatpush.msrb.mxu2 %v167_v30  ;;  %385 = vmatpush.msrb.mxu3 %v201_v31  ;;  %v89_v0 = vld [vmem:[#allocation5 + $0x18] sm:$0xff]  ;;  %v123_v1 = vld [vmem:[#allocation5 + $0x128] sm:$0xff] }
  0x45   :  { %326 = vmatpush.msrb.mxu0 %v103_v32  ;;  %345 = vmatpush.msrb.mxu1 %v137_v33  ;;  %v151_v2 = vld [vmem:[#allocation5 + $0x208] sm:$0xff]  ;;  %v185_v3 = vld [vmem:[#allocation5 + $0x318] sm:$0xff] }
  0x46   :  { %367 = vmatpush.msrb.mxu2 %v165_v34  ;;  %386 = vmatpush.msrb.mxu3 %v199_v35  ;;  %v87_v4 = vld [vmem:[#allocation5 + $0x8] sm:$0xff]  ;;  %v121_v5 = vld [vmem:[#allocation5 + $0x118] sm:$0xff] }
  0x47   :  { %327 = vmatpush.msrb.mxu0 %v101_v36  ;;  %346 = vmatpush.msrb.mxu1 %v135_v37  ;;  %v183_v6 = vld [vmem:[#allocation5 + $0x308] sm:$0xff]  ;;  %v416_v8 = vld [vmem:[#allocation8 + $0x78] sm:$0xff]  ;;  %v415_v9 = vld [vmem:[#allocation8 + $0x70] sm:$0xff] }
  0x48   :  { %368 = vmatpush.msrb.mxu2 %v163_v38  ;;  %387 = vmatpush.msrb.mxu3 %v197_v39  ;;  %v119_v7 = vld [vmem:[#allocation5 + $0x108] sm:$0xff]  ;;  %v432_v10 = vld [vmem:[#allocation8 + $0xf8] sm:$0xff]  ;;  %v431_v12 = vld [vmem:[#allocation8 + $0xf0] sm:$0xff] }
  0x49   :  { %328 = vmatpush.msrb.mxu0 %v99_v40  ;;  %347 = vmatpush.msrb.mxu1 %v133_v41  ;;  %v414_v11 = vld [vmem:[#allocation8 + $0x68] sm:$0xff]  ;;  %v413_v13 = vld [vmem:[#allocation8 + $0x60] sm:$0xff]  ;;  %v412_v15 = vld [vmem:[#allocation8 + $0x58] sm:$0xff] }
  0x4a   :  { %369 = vmatpush.msrb.mxu2 %v161_v42  ;;  %388 = vmatpush.msrb.mxu3 %v195_v43  ;;  %v430_v14 = vld [vmem:[#allocation8 + $0xe8] sm:$0xff]  ;;  %v429_v16 = vld [vmem:[#allocation8 + $0xe0] sm:$0xff]  ;;  %v411_v17 = vld [vmem:[#allocation8 + $0x50] sm:$0xff] }
  0x4b   :  { %329 = vmatpush.msrb.mxu0 %v97_v44  ;;  %348 = vmatpush.msrb.mxu1 %v131_v45  ;;  %v428_v18 = vld [vmem:[#allocation8 + $0xd8] sm:$0xff]  ;;  %v410_v19 = vld [vmem:[#allocation8 + $0x48] sm:$0xff]  ;;  %v427_v20 = vld [vmem:[#allocation8 + $0xd0] sm:$0xff] }
  0x4c   :  { %370 = vmatpush.msrb.mxu2 %v159_v46  ;;  %389 = vmatpush.msrb.mxu3 %v193_v47  ;;  %v409_v21 = vld [vmem:[#allocation8 + $0x40] sm:$0xff]  ;;  %v408_v22 = vld [vmem:[#allocation8 + $0x38] sm:$0xff]  ;;  %v407_v23 = vld [vmem:[#allocation8 + $0x30] sm:$0xff] }
  0x4d   :  { %295 = vmatmul.f32.vlgmr.msra.gmra.mxu2 %v233_v48  ;;  %330 = vmatpush.msrb.mxu0 %v95_v49  ;;  %v406_v24 = vld [vmem:[#allocation8 + $0x28] sm:$0xff]  ;;  %v405_v26 = vld [vmem:[#allocation8 + $0x20] sm:$0xff]  ;;  %v404_v28 = vld [vmem:[#allocation8 + $0x18] sm:$0xff] }
  0x4e   :  { %349 = vmatpush.msrb.mxu1 %v129_v50  ;;  %371 = vmatpush.msrb.mxu2 %v157_v51  ;;  %v426_v25 = vld [vmem:[#allocation8 + $0xc8] sm:$0xff]  ;;  %v425_v27 = vld [vmem:[#allocation8 + $0xc0] sm:$0xff]  ;;  %v424_v29 = vld [vmem:[#allocation8 + $0xb8] sm:$0xff] }
  0x4f   :  { %390 = vmatpush.msrb.mxu3 %v191_v52  ;;  %255 = vmatmul.f32.vlgmr.msra.gmra.mxu0 %v231_v53  ;;  %v403_v30 = vld [vmem:[#allocation8 + $0x10] sm:$0xff]  ;;  %v402_v32 = vld [vmem:[#allocation8 + $0x8] sm:$0xff]  ;;  %v401_v34 = vld [vmem:[#allocation8] sm:$0xff] }
  0x50   :  { %315 = vmatmul.f32.vlgmr.msra.gmra.mxu3 %v234_v54  ;;  %331 = vmatpush.msrb.mxu0 %v93_v55  ;;  %v423_v31 = vld [vmem:[#allocation8 + $0xb0] sm:$0xff]  ;;  %v422_v33 = vld [vmem:[#allocation8 + $0xa8] sm:$0xff]  ;;  %v421_v35 = vld [vmem:[#allocation8 + $0xa0] sm:$0xff] }
  0x51   :  { %350 = vmatpush.msrb.mxu1 %v127_v56  ;;  %372 = vmatpush.msrb.mxu2 %v155_v57  ;;  %v420_v36 = vld [vmem:[#allocation8 + $0x98] sm:$0xff]  ;;  %v419_v37 = vld [vmem:[#allocation8 + $0x90] sm:$0xff]  ;;  %v418_v38 = vld [vmem:[#allocation8 + $0x88] sm:$0xff] }
  0x52   :  { %391 = vmatpush.msrb.mxu3 %v189_v58  ;;  %275 = vmatmul.f32.vlgmr.msra.gmra.mxu1 %v232_v59  ;;  %v417_v39 = vld [vmem:[#allocation8 + $0x80] sm:$0xff]  ;;  %v214_v40 = vld [vmem:[#allocation7] sm:$0x3] }
  0x53   :  { %332 = vmatpush.msrb.mxu0 %v91_v60  ;;  %351 = vmatpush.msrb.mxu1 %v125_v61  ;;  %v216_v41 = vperm.slane %v214_v40, 0  ;;  %v217_v49 = vperm.slane %v214_v40, 1  ;;  %v510_v61 = vld [vmem:[%s702_s4] ss:$0 sm:$0xff] }
  0x54   :  { %373 = vmatpush.msrb.mxu2 %v153_v62  ;;  %392 = vmatpush.msrb.mxu3 %v187_v63 }
  0x55   :  { %333 = vmatpush.msrb.mxu0 %v89_v0  ;;  %352 = vmatpush.msrb.mxu1 %v123_v1 }
  0x56   :  { %374 = vmatpush.msrb.mxu2 %v151_v2  ;;  %393 = vmatpush.msrb.mxu3 %v185_v3 }
  0x57   :  { %375 = vmatmul.f32.vlgmr.msrb.gmra.mxu2 %v233_v48  ;;  %334 = vmatpush.msrb.mxu0 %v87_v4 }
  0x58   :  { %353 = vmatpush.msrb.mxu1 %v121_v5  ;;  %394 = vmatpush.msrb.mxu3 %v183_v6 }
  0x59   :  { %335 = vmatmul.f32.vlgmr.msrb.gmra.mxu0 %v231_v53  ;;  %395 = vmatmul.f32.vlgmr.msrb.gmra.mxu3 %v234_v54 }
  0x5a   :  { %354 = vmatpush.msrb.mxu1 %v119_v7  ;;  %437 = vmatpush.msra.mxu0 %v416_v8 }
  0x5b   :  { %355 = vmatmul.f32.vlgmr.msrb.gmra.mxu1 %v232_v59 }
  0x5c   :  { %438 = vmatpush.msra.mxu0 %v415_v9  ;;  %457 = vmatpush.msra.mxu1 %v432_v10 }
  0x5e   :  { %439 = vmatpush.msra.mxu0 %v414_v11  ;;  %458 = vmatpush.msra.mxu1 %v431_v12 }
  0x60   :  { %440 = vmatpush.msra.mxu0 %v413_v13  ;;  %459 = vmatpush.msra.mxu1 %v430_v14 }
  0x62   :  { %441 = vmatpush.msra.mxu0 %v412_v15  ;;  %460 = vmatpush.msra.mxu1 %v429_v16 }
  0x64   :  { %442 = vmatpush.msra.mxu0 %v411_v17  ;;  %461 = vmatpush.msra.mxu1 %v428_v18 }
  0x66   :  { %443 = vmatpush.msra.mxu0 %v410_v19  ;;  %462 = vmatpush.msra.mxu1 %v427_v20 }
  0x68   :  { %444 = vmatpush.msra.mxu0 %v409_v21  ;;  %463 = vmatpush.msra.mxu1 %v426_v25 }
  0x6a   :  { %445 = vmatpush.msra.mxu0 %v408_v22  ;;  %464 = vmatpush.msra.mxu1 %v425_v27 }
  0x6c   :  { %446 = vmatpush.msra.mxu0 %v407_v23  ;;  %465 = vmatpush.msra.mxu1 %v424_v29 }
  0x6e   :  { %447 = vmatpush.msra.mxu0 %v406_v24  ;;  %466 = vmatpush.msra.mxu1 %v423_v31 }
  0x70   :  { %448 = vmatpush.msra.mxu0 %v405_v26  ;;  %467 = vmatpush.msra.mxu1 %v422_v33 }
  0x72   :  { %449 = vmatpush.msra.mxu0 %v404_v28  ;;  %468 = vmatpush.msra.mxu1 %v421_v35 }
  0x74   :  { %450 = vmatpush.msra.mxu0 %v403_v30  ;;  %469 = vmatpush.msra.mxu1 %v420_v36 }
  0x76   :  { %451 = vmatpush.msra.mxu0 %v402_v32  ;;  %470 = vmatpush.msra.mxu1 %v419_v37 }
  0x78   :  { %452 = vmatpush.msra.mxu0 %v401_v34  ;;  %471 = vmatpush.msra.mxu1 %v418_v38 }
  0x7a   :  { %472 = vmatpush.msra.mxu1 %v417_v39 }
  0xcc   :  { %v256_v42 = vpop.f32.mrf.mxu0 }
  0xcd   :  { %v257_v43 = vadd.f32 %v256_v42, %v216_v41 }
  0xcf   :  { %v276_v44 = vpop.f32.mrf.mxu1 }
  0xd0   :  { %v277_v45 = vadd.f32 %v276_v44, %v257_v43  ;;  %v296_v46 = vpop.f32.mrf.mxu2 }
  0xd2   :  { %v297_v47 = vadd.f32 %v296_v46, %v277_v45 }
  0xd3   :  { %v316_v48 = vpop.f32.mrf.mxu3 }
  0xd4   :  { %v317_v50 = vadd.f32 %v316_v48, %v297_v47 }
  0xd6   :  { %v399_v51 = vmax.f32 %v317_v50, 0.0  ;;  %v336_v52 = vpop.f32.mrf.mxu0 }
  0xd7   :  { %v337_v53 = vadd.f32 %v336_v52, %v217_v49 }
  0xd8   :  { %v356_v54 = vpop.f32.mrf.mxu1  ;;  %453 = vmatmul.f32.vlgmr.msra.gmra.mxu0 %v399_v51 }
  0xd9   :  { %v357_v55 = vadd.f32 %v356_v54, %v337_v53 }
  0xda   :  { %v376_v56 = vpop.f32.mrf.mxu2 }
  0xdb   :  { %v377_v57 = vadd.f32 %v376_v56, %v357_v55 }
  0xdc   :  { %v396_v58 = vpop.f32.mrf.mxu3 }
  0xdd   :  { %v397_v59 = vadd.f32 %v396_v58, %v377_v57 }
  0xdf   :  { %v400_v60 = vmax.f32 %v397_v59, 0.0 }
  0xe1   :  { %473 = vmatmul.f32.vlgmr.msra.gmra.mxu1 %v400_v60 }
 0x155   :  { %v454_v62 = vpop.f32.mrf.mxu0 }
 0x156   :  { %v455_v63 = vadd.f32 %v510_v61, %v454_v62 }
 0x15e   :  { %v474_v0 = vpop.f32.mrf.mxu1 }
 0x15f   :  { %v475_v1 = vadd.f32 %v474_v0, %v455_v63 }
 0x161   :  { %477 = vst [vmem:[#allocation10] sm:$0xff] %v475_v1 }
 0x162   :  { %481 = vsyncadd [#allocation4], 64  ;;  %s484_s17 = sshll.u32 %s703_s5, 4  ;;  %s647_s18 = smov [#allocation10]   ;;  %s485_s17 = int_to_ptr.hbm [resolvable:$true] %s484_s17 }
 0x163   :  { %s482_s19 = sshll.u32 %s647_s18, 4  ;;  %s648_s20 = smov 64   ;;  %s483_s19 = int_to_ptr.vmem [resolvable:$true] %s482_s19 }
 0x164   :  { %s649_s21 = smov 4  }
 0x165   :  { %490 = dma.vmem_to_hbm [thread:$0]  %s483_s19, 64, %s485_s17, [#allocation4], %s648_s20, %s648_s20, %s649_s21  }
 0x166   :  { %637 = dma.done.wait [#allocation4], 128  }
 0x167   :  { %638 = vsyncadd [#allocation4], 4294967168 }
 0x168   :  { %495 = vsyncpa [#allocation3], 1 }
 0x169   :  { %496 = vsyncpa [#allocation6], 1 }
 0x16a   :  { %497 = vsyncpa [#allocation9], 1 }
 0x16b   :  { %498 = vsyncpa [#allocation4], 1 }

</bundles_post_ra>
